<compile_context>
chip_gen: v5e
topology: v5e:2x2
jax: 0.10.0
libtpu: 0.0.40
codegen_flags: <defaults>
</compile_context>

<pallas_src>
import functools

import jax
import jax.numpy as jnp
from jax.experimental import pallas as pl
from jax.experimental.pallas import tpu as pltpu


def _dqn_kernel(x_ref, w1_ref, b1_ref, w2_ref, b2_ref, w3_ref, b3_ref, o_ref):
    # x_ref : (TM, 16)  bf16         w1_ref: (16, 128)  bf16   b1_ref: (1, 128) f32
    # w2_ref: (128, 128) bf16        b2_ref: (1, 128)  f32
    # w3_ref: (128, 128) bf16 (out lanes 4..127 are zero-padding)
    # b3_ref: (1, 128)  f32          o_ref : (TM, 128) f32
    h1 = jnp.dot(x_ref[...], w1_ref[...], preferred_element_type=jnp.float32)
    h1 = jnp.maximum(h1 + b1_ref[...], 0.0).astype(jnp.bfloat16)

    h2 = jnp.dot(h1, w2_ref[...], preferred_element_type=jnp.float32)
    h2 = jnp.maximum(h2 + b2_ref[...], 0.0).astype(jnp.bfloat16)

    out = jnp.dot(h2, w3_ref[...], preferred_element_type=jnp.float32) + b3_ref[...]
    o_ref[...] = out.astype(o_ref.dtype)


def prepare_params(params):
    """One-time conversion from PyTorch (out, in) f32 params to kernel layout.

    Transposes to (in, out), casts weights to bf16, zero-pads fc3 to 128 lanes.
    Call this once at checkpoint-load time, NOT per forward call.
    """
    w1 = params["w1"].T.astype(jnp.bfloat16)              # (16, 128)
    w2 = params["w2"].T.astype(jnp.bfloat16)              # (128, 128)
    w3 = params["w3"].T.astype(jnp.bfloat16)              # (128, 4)
    b1 = params["b1"][None, :].astype(jnp.float32)        # (1, 128)
    b2 = params["b2"][None, :].astype(jnp.float32)        # (1, 128)
    b3 = params["b3"][None, :].astype(jnp.float32)        # (1, 4)

    # Lane-dense final layer: pad output dim 4 -> 128 (padding columns are zero,
    # they are sliced off in the wrapper).
    w3p = jnp.zeros((128, 128), jnp.bfloat16).at[:, :4].set(w3)
    b3p = jnp.zeros((1, 128), jnp.float32).at[:, :4].set(b3)

    return {"w1": w1, "b1": b1, "w2": w2, "b2": b2, "w3": w3p, "b3": b3p}


def _round_up(n, m):
    return (n + m - 1) // m * m


@functools.partial(jax.jit, static_argnames=("tm",))
def dqn_forward_batched(xb, prep, tm=256):
    """Batched forward: xb (B, 16) -> (B, 4) float32.

    tm: batch tile. 256 fills the v6e/v7x MXU per pass; 128 suffices on v5e.
    Small batches shrink the tile automatically (min sublane multiple of 8).
    """
    B = xb.shape[0]
    tm = min(tm, _round_up(B, 8))
    b_pad = pl.cdiv(B, tm) * tm

    xb = xb.astype(jnp.bfloat16)
    if b_pad != B:
        xb = jnp.pad(xb, ((0, b_pad - B), (0, 0)))

    resident = lambda shape: pl.BlockSpec(shape, lambda i: (0, 0))

    out = pl.pallas_call(
        _dqn_kernel,
        out_shape=jax.ShapeDtypeStruct((b_pad, 128), jnp.float32),
        grid=(b_pad // tm,),
        in_specs=[
            pl.BlockSpec((tm, 16), lambda i: (i, 0)),   # activations: tiled over batch
            resident((16, 128)),                        # weights/biases: VMEM-resident
            resident((1, 128)),
            resident((128, 128)),
            resident((1, 128)),
            resident((128, 128)),
            resident((1, 128)),
        ],
        out_specs=pl.BlockSpec((tm, 128), lambda i: (i, 0)),
        compiler_params=pltpu.CompilerParams(
            dimension_semantics=("parallel",),
        ),
    )(xb, prep["w1"], prep["b1"], prep["w2"], prep["b2"], prep["w3"], prep["b3"])

    return out[:B, :4]


def dqn_forward(x, prep):
    """Single-sample forward matching the PyTorch module:
    torch.flatten(x) -> fc1 -> relu -> fc2 -> relu -> fc3, returns shape (4,)."""
    x_row = jnp.reshape(x, (1, 16)).astype(jnp.float32)
    return dqn_forward_batched(x_row, prep)[0]


def init_params(key):
    """Deterministic init mimicking nn.Linear default (uniform +-1/sqrt(fan_in)),
    stored in PyTorch (out_features, in_features) convention, f32."""
    ks = jax.random.split(key, 6)

    def linear(kw, kb, out_f, in_f):
        bound = 1.0 / jnp.sqrt(jnp.float32(in_f))
        w = jax.random.uniform(kw, (out_f, in_f), jnp.float32, -bound, bound)
        b = jax.random.uniform(kb, (out_f,), jnp.float32, -bound, bound)
        return w, b

    w1, b1 = linear(ks[0], ks[1], 128, 16)
    w2, b2 = linear(ks[2], ks[3], 128, 128)
    w3, b3 = linear(ks[4], ks[5], 4, 128)
    return {"w1": w1, "b1": b1, "w2": w2, "b2": b2, "w3": w3, "b3": b3}


def _reference(xb, p):
    # f32 reference in PyTorch convention; xb: (B, 16)
    h1 = jnp.maximum(xb @ p["w1"].T + p["b1"], 0.0)
    h2 = jnp.maximum(h1 @ p["w2"].T + p["b2"], 0.0)
    return h2 @ p["w3"].T + p["b3"]


if __name__ == "__main__":
    key = jax.random.PRNGKey(0)
    k_x, k_xb, k_p = jax.random.split(key, 3)

    params = init_params(k_p)        # PyTorch-convention f32 params
    prep = prepare_params(params)    # one-time layout prep (transpose/bf16/pad)

    # 1) Single-sample path: 4x4 "state" grid, flattened to 16 (torch.flatten).
    x = jax.random.normal(k_x, (4, 4), jnp.float32)
    out = jax.block_until_ready(dqn_forward(x, prep))
    ref = _reference(jnp.reshape(x, (1, 16)), params)[0]
    assert out.shape == (4,)
    # bf16 weights => looser tolerance vs the f32 reference.
    assert jnp.allclose(out, ref, atol=5e-2, rtol=5e-2)

    # 2) Batched path (the perf-relevant one): 64 states at once.
    xb = jax.random.normal(k_xb, (64, 4, 4), jnp.float32).reshape(64, 16)
    outb = jax.block_until_ready(dqn_forward_batched(xb, prep))
    refb = _reference(xb, params)
    assert outb.shape == (64, 4)
    assert jnp.allclose(outb, refb, atol=5e-2, rtol=5e-2)

    print("KERNEL_OK")
</pallas_src>

<mosaic_0001>
module attributes {stable_mosaic.version = 11 : i64} {
  func.func @_dqn_kernel(%arg0: i32, %arg1: memref<8x16xbf16, #tpu.memory_space<vmem>>, %arg2: memref<16x128xbf16, #tpu.memory_space<vmem>>, %arg3: memref<1x128xf32, #tpu.memory_space<vmem>>, %arg4: memref<128x128xbf16, #tpu.memory_space<vmem>>, %arg5: memref<1x128xf32, #tpu.memory_space<vmem>>, %arg6: memref<128x128xbf16, #tpu.memory_space<vmem>>, %arg7: memref<1x128xf32, #tpu.memory_space<vmem>>, %arg8: memref<8x128xf32, #tpu.memory_space<vmem>>) attributes {dimension_semantics = [#tpu.dimension_semantics<parallel>], iteration_bounds = array<i64: 1>, scalar_prefetch = 0 : i64, scratch_operands = 0 : i64, tpu.core_type = #tpu.core_type<tc>, window_params = [{transform_indices = @transform_0, window_bounds = array<i64: 8, 16>}, {pipeline_mode = #tpu.pipeline_mode<synchronous>, transform_indices = @transform_1, window_bounds = array<i64: 16, 128>}, {pipeline_mode = #tpu.pipeline_mode<synchronous>, transform_indices = @transform_2, window_bounds = array<i64: 1, 128>}, {pipeline_mode = #tpu.pipeline_mode<synchronous>, transform_indices = @transform_3, window_bounds = array<i64: 128, 128>}, {pipeline_mode = #tpu.pipeline_mode<synchronous>, transform_indices = @transform_4, window_bounds = array<i64: 1, 128>}, {pipeline_mode = #tpu.pipeline_mode<synchronous>, transform_indices = @transform_5, window_bounds = array<i64: 128, 128>}, {pipeline_mode = #tpu.pipeline_mode<synchronous>, transform_indices = @transform_6, window_bounds = array<i64: 1, 128>}, {transform_indices = @transform_7, window_bounds = array<i64: 8, 128>}]} {
    %c0 = arith.constant 0 : index
    %c0_0 = arith.constant 0 : index
    %0 = vector.load %arg1[%c0, %c0_0] : memref<8x16xbf16, #tpu.memory_space<vmem>>, vector<8x16xbf16>
    %c0_1 = arith.constant 0 : index
    %c0_2 = arith.constant 0 : index
    %1 = vector.load %arg2[%c0_1, %c0_2] : memref<16x128xbf16, #tpu.memory_space<vmem>>, vector<16x128xbf16>
    %cst = arith.constant dense<0.000000e+00> : vector<8x128xf32>
    %2 = tpu.matmul %0, %1, %cst {dimension_numbers = #tpu.dot_dimension_numbers<[1], [0], [0], [1], [0, 0, 1, 1], [], []>} : vector<8x16xbf16>, vector<16x128xbf16>, vector<8x128xf32> -> vector<8x128xf32>
    %c0_3 = arith.constant 0 : index
    %c0_4 = arith.constant 0 : index
    %3 = vector.load %arg3[%c0_3, %c0_4] : memref<1x128xf32, #tpu.memory_space<vmem>>, vector<1x128xf32>
    %4 = vector.broadcast %3 : vector<1x128xf32> to vector<8x128xf32>
    %5 = arith.addf %2, %4 : vector<8x128xf32>
    %cst_5 = arith.constant 0.000000e+00 : f32
    %6 = vector.broadcast %cst_5 : f32 to vector<8x128xf32>
    %7 = arith.maximumf %5, %6 : vector<8x128xf32>
    %8 = arith.truncf %7 : vector<8x128xf32> to vector<8x128xbf16>
    %c0_6 = arith.constant 0 : index
    %c0_7 = arith.constant 0 : index
    %9 = vector.load %arg4[%c0_6, %c0_7] : memref<128x128xbf16, #tpu.memory_space<vmem>>, vector<128x128xbf16>
    %cst_8 = arith.constant dense<0.000000e+00> : vector<8x128xf32>
    %10 = tpu.matmul %8, %9, %cst_8 {dimension_numbers = #tpu.dot_dimension_numbers<[1], [0], [0], [1], [0, 0, 1, 1], [], []>} : vector<8x128xbf16>, vector<128x128xbf16>, vector<8x128xf32> -> vector<8x128xf32>
    %c0_9 = arith.constant 0 : index
    %c0_10 = arith.constant 0 : index
    %11 = vector.load %arg5[%c0_9, %c0_10] : memref<1x128xf32, #tpu.memory_space<vmem>>, vector<1x128xf32>
    %12 = vector.broadcast %11 : vector<1x128xf32> to vector<8x128xf32>
    %13 = arith.addf %10, %12 : vector<8x128xf32>
    %cst_11 = arith.constant 0.000000e+00 : f32
    %14 = vector.broadcast %cst_11 : f32 to vector<8x128xf32>
    %15 = arith.maximumf %13, %14 : vector<8x128xf32>
    %16 = arith.truncf %15 : vector<8x128xf32> to vector<8x128xbf16>
    %c0_12 = arith.constant 0 : index
    %c0_13 = arith.constant 0 : index
    %17 = vector.load %arg6[%c0_12, %c0_13] : memref<128x128xbf16, #tpu.memory_space<vmem>>, vector<128x128xbf16>
    %cst_14 = arith.constant dense<0.000000e+00> : vector<8x128xf32>
    %18 = tpu.matmul %16, %17, %cst_14 {dimension_numbers = #tpu.dot_dimension_numbers<[1], [0], [0], [1], [0, 0, 1, 1], [], []>} : vector<8x128xbf16>, vector<128x128xbf16>, vector<8x128xf32> -> vector<8x128xf32>
    %c0_15 = arith.constant 0 : index
    %c0_16 = arith.constant 0 : index
    %19 = vector.load %arg7[%c0_15, %c0_16] : memref<1x128xf32, #tpu.memory_space<vmem>>, vector<1x128xf32>
    %20 = vector.broadcast %19 : vector<1x128xf32> to vector<8x128xf32>
    %21 = arith.addf %18, %20 : vector<8x128xf32>
    %c0_17 = arith.constant 0 : index
    %c0_18 = arith.constant 0 : index
    %22 = vector.load %arg8[%c0_17, %c0_18] : memref<8x128xf32, #tpu.memory_space<vmem>>, vector<8x128xf32>
    tpu.vector_store %arg8[%c0_17, %c0_18], %21 {strides = array<i32>} : memref<8x128xf32, #tpu.memory_space<vmem>>, vector<8x128xf32>,
    return
  }
  func.func @transform_0(%arg0: i32) -> (i32, i32) {
    %c0_i32 = arith.constant 0 : i32
    %c0_i32_0 = arith.constant 0 : i32
    return %arg0, %c0_i32 : i32, i32
  }
  func.func @transform_1(%arg0: i32) -> (i32, i32) {
    %c0_i32 = arith.constant 0 : i32
    %c0_i32_0 = arith.constant 0 : i32
    %c0_i32_1 = arith.constant 0 : i32
    return %c0_i32, %c0_i32_0 : i32, i32
  }
  func.func @transform_2(%arg0: i32) -> (i32, i32) {
    %c0_i32 = arith.constant 0 : i32
    %c0_i32_0 = arith.constant 0 : i32
    %c0_i32_1 = arith.constant 0 : i32
    return %c0_i32, %c0_i32_0 : i32, i32
  }
  func.func @transform_3(%arg0: i32) -> (i32, i32) {
    %c0_i32 = arith.constant 0 : i32
    %c0_i32_0 = arith.constant 0 : i32
    %c0_i32_1 = arith.constant 0 : i32
    return %c0_i32, %c0_i32_0 : i32, i32
  }
  func.func @transform_4(%arg0: i32) -> (i32, i32) {
    %c0_i32 = arith.constant 0 : i32
    %c0_i32_0 = arith.constant 0 : i32
    %c0_i32_1 = arith.constant 0 : i32
    return %c0_i32, %c0_i32_0 : i32, i32
  }
  func.func @transform_5(%arg0: i32) -> (i32, i32) {
    %c0_i32 = arith.constant 0 : i32
    %c0_i32_0 = arith.constant 0 : i32
    %c0_i32_1 = arith.constant 0 : i32
    return %c0_i32, %c0_i32_0 : i32, i32
  }
  func.func @transform_6(%arg0: i32) -> (i32, i32) {
    %c0_i32 = arith.constant 0 : i32
    %c0_i32_0 = arith.constant 0 : i32
    %c0_i32_1 = arith.constant 0 : i32
    return %c0_i32, %c0_i32_0 : i32, i32
  }
  func.func @transform_7(%arg0: i32) -> (i32, i32) {
    %c0_i32 = arith.constant 0 : i32
    %c0_i32_0 = arith.constant 0 : i32
    return %arg0, %c0_i32 : i32, i32
  }
}

</mosaic_0001>

<bundles_post_ra>
// kernel: dqn_forward_batched.1
= control target key start
LH: loop header
LB: loop body
LE: loop exit
PB: predicated region body
PF: predicated region fallthrough
CT: control target
= control target key end

     0   :  { %12 = vsyncpa [#allocation3], 0  ;;  %s475_s0 = inlined_call_operand.vmem [shape: bf16[8,16], index: 0, kind: input, shape index: {}]   ;;  %s476_s1 = inlined_call_operand.vmem [shape: bf16[16,128], index: 1, kind: input, shape index: {}]   ;;  %s477_s2 = inlined_call_operand.vmem [shape: f32[1,128], index: 2, kind: input, shape index: {}]   ;;  %s478_s3 = inlined_call_operand.hbm [shape: bf16[128,128], index: 3, kind: input, shape index: {}]   ;;  %s479_s4 = inlined_call_operand.vmem [shape: f32[1,128], index: 4, kind: input, shape index: {}]   ;;  %s480_s5 = inlined_call_operand.hbm [shape: bf16[128,128], index: 5, kind: input, shape index: {}]   ;;  %s481_s6 = inlined_call_operand.vmem [shape: f32[1,128], index: 6, kind: input, shape index: {}]   ;;  %s482_s7 = inlined_call_operand.vmem [shape: f32[8,128], index: 7, kind: output, shape index: {}]  }
   0x1   :  { %s24_s26 = sshll.u32 %s478_s3, 4  ;;  %s25_s26 = int_to_ptr.hbm [resolvable:$true] %s24_s26 }
   0x2   :  { %13 = vsyncpa [#allocation5], 0  ;;  %s407_s27 = smov [#allocation2]   ;;  %s39_s8 = sshll.u32 %s480_s5, 4  ;;  %s40_s8 = int_to_ptr.hbm [resolvable:$true] %s39_s8 }
   0x3   :  { %s26_s28 = sshll.u32 %s407_s27, 4  ;;  %s408_s9 = smov 64   ;;  %s27_s28 = int_to_ptr.vmem [resolvable:$true] %s26_s28 }
   0x4   :  { %s409_s10 = smov 4   ;;  %s410_s11 = smov [#allocation4]  }
   0x5   :  { %32 = dma.hbm_to_vmem [thread:$0]  %s25_s26, 1024, %s27_s28, [#allocation3], %s408_s9, %s408_s9, %s409_s10  }
   0x6   :  { %s41_s12 = sshll.u32 %s410_s11, 4  ;;  %s42_s12 = int_to_ptr.vmem [resolvable:$true] %s41_s12 }
   0x7   :  { %47 = dma.hbm_to_vmem [thread:$0]  %s40_s8, 1024, %s42_s12, [#allocation5], %s408_s9, %s408_s9, %s409_s10  }
   0x8   :  { %403 = dma.done.wait [#allocation3], 1024  }
   0x9   :  { %404 = vsyncadd [#allocation3], 4294966272 }
   0xa   :  { %405 = dma.done.wait [#allocation5], 1024  }
   0xb   :  { %406 = vsyncadd [#allocation5], 4294966272  ;;  %v331_v0 = vld [vmem:[%s476_s1] sm:$0xff]  ;;  %v339_v1 = vld [vmem:[#allocation2 + $0x38] sm:$0xff]  ;;  %vm72_vm0 = vcmask 130048  }
   0xc   :  { %83 = vmatpush.bf16.msra.mxu0 %v331_v0  ;;  %v59_v2 = vld [vmem:[%s475_s0] sm:$0xf]  ;;  %159 = vmatpush.bf16.msra.mxu1 %v339_v1  ;;  %v338_v3 = vld [vmem:[#allocation2 + $0x30] sm:$0xff]  ;;  %v337_v4 = vld [vmem:[#allocation2 + $0x28] sm:$0xff] }
   0xd   :  { %v336_v5 = vld [vmem:[#allocation2 + $0x20] sm:$0xff]  ;;  %v335_v6 = vld [vmem:[#allocation2 + $0x18] sm:$0xff]  ;;  %v334_v7 = vld [vmem:[#allocation2 + $0x10] sm:$0xff] }
   0xe   :  { %v333_v8 = vld [vmem:[#allocation2 + $0x8] sm:$0xff]  ;;  %v332_v9 = vld [vmem:[#allocation2] sm:$0xff]  ;;  %v347_v10 = vld [vmem:[#allocation4 + $0x38] sm:$0xff] }
   0xf   :  { %266 = vmatmul.msk.bf16.vlgmr.msra.gmra.mxu0 %vm72_vm0, %v59_v2  ;;  %242 = vmatpush.bf16.msra.mxu2 %v347_v10  ;;  %v346_v11 = vld [vmem:[#allocation4 + $0x30] sm:$0xff]  ;;  %v345_v12 = vld [vmem:[#allocation4 + $0x28] sm:$0xff]  ;;  %v344_v13 = vld [vmem:[#allocation4 + $0x20] sm:$0xff] }
  0x10   :  { %160 = vmatpush.bf16.msra.mxu1 %v338_v3  ;;  %v343_v14 = vld [vmem:[#allocation4 + $0x18] sm:$0xff]  ;;  %v342_v15 = vld [vmem:[#allocation4 + $0x10] sm:$0xff]  ;;  %v352_v16 = vld [vmem:[%s477_s2] ss:$0 sm:$0xff] }
  0x11   :  { %v341_v22 = vld [vmem:[#allocation4 + $0x8] sm:$0xff]  ;;  %v340_v23 = vld [vmem:[#allocation4] sm:$0xff] }
  0x12   :  { %v353_v24 = vld [vmem:[%s479_s4] ss:$0 sm:$0xff] }
  0x13   :  { %243 = vmatpush.bf16.msra.mxu2 %v346_v11  ;;  %v354_v30 = vld [vmem:[%s481_s6] ss:$0 sm:$0xff] }
  0x14   :  { %161 = vmatpush.bf16.msra.mxu1 %v337_v4 }
  0x17   :  { %244 = vmatpush.bf16.msra.mxu2 %v345_v12 }
  0x18   :  { %162 = vmatpush.bf16.msra.mxu1 %v336_v5 }
  0x1b   :  { %245 = vmatpush.bf16.msra.mxu2 %v344_v13 }
  0x1c   :  { %163 = vmatpush.bf16.msra.mxu1 %v335_v6 }
  0x1f   :  { %246 = vmatpush.bf16.msra.mxu2 %v343_v14 }
  0x20   :  { %164 = vmatpush.bf16.msra.mxu1 %v334_v7 }
  0x23   :  { %247 = vmatpush.bf16.msra.mxu2 %v342_v15 }
  0x24   :  { %165 = vmatpush.bf16.msra.mxu1 %v333_v8 }
  0x27   :  { %248 = vmatpush.bf16.msra.mxu2 %v341_v22 }
  0x28   :  { %166 = vmatpush.bf16.msra.mxu1 %v332_v9 }
  0x2b   :  { %249 = vmatpush.bf16.msra.mxu2 %v340_v23 }
  0x8c   :  { %v85_v17 = vpop.f32.mrf.mxu0 }
  0x8d   :  { %v86_v18 = vadd.f32 %v352_v16, %v85_v17 }
  0x8f   :  { %v89_v19 = vmax.f32 %v86_v18, 0.0 }
  0x91   :  { %v90_v20 = vpack.c.bf16 %v89_v19, %v89_v19 }
  0x93   :  { %167 = vmatmul.bf16.vlgmr.msra.gmra.mxu1 %v90_v20 }
  0x94   :  { %v87_v21 = vpop.f32.mrf.mxu0 }
 0x110   :  { %v168_v25 = vpop.f32.mrf.mxu1 }
 0x111   :  { %v169_v26 = vadd.f32 %v353_v24, %v168_v25 }
 0x113   :  { %v172_v27 = vmax.f32 %v169_v26, 0.0 }
 0x115   :  { %v173_v28 = vpack.c.bf16 %v172_v27, %v172_v27 }
 0x117   :  { %250 = vmatmul.bf16.vlgmr.msra.gmra.mxu2 %v173_v28 }
 0x118   :  { %v170_v29 = vpop.f32.mrf.mxu1 }
 0x19a   :  { %v251_v31 = vpop.f32.mrf.mxu2 }
 0x19b   :  { %v252_v32 = vadd.f32 %v354_v30, %v251_v31 }
 0x19d   :  { %255 = vst [vmem:[%s482_s7] sm:$0xff] %v252_v32 }
 0x1a2   :  { %v253_v33 = vpop.f32.mrf.mxu2 }
 0x1a3   :  { %260 = vsyncpa [#allocation3], 1 }
 0x1a4   :  { %261 = vsyncpa [#allocation5], 1 }

</bundles_post_ra>
